<compile_context>
chip_gen: v7x
topology: tpu7x:2x2x1
jax: 0.10.0
libtpu: 0.0.40
codegen_flags: <defaults>
</compile_context>

<pallas_src>
import jax
import jax.numpy as jnp
from jax import lax
from jax.experimental import pallas as pl
from jax.experimental.pallas import tpu as pltpu
import numpy as np


def _round_up(v, m):
    return ((v + m - 1) // m) * m


def _sinusoid_table(n_position, d_hid):
    """Numpy port of get_sinusoid_encoding_table (padding_idx=None)."""
    pos = np.arange(n_position, dtype=np.float64)[:, None]
    hid = np.arange(d_hid, dtype=np.int64)[None, :]
    angle = pos / np.power(10000.0, 2.0 * (hid // 2) / float(d_hid))
    table = angle.copy()
    table[:, 0::2] = np.sin(angle[:, 0::2])
    table[:, 1::2] = np.cos(angle[:, 1::2])
    return table.astype(np.float32)


def _mish(v):
    # mish(v) = v * tanh(softplus(v)), numerically-stable softplus (exp/log/tanh -> EUP).
    sp = jnp.maximum(v, 0.0) + jnp.log(1.0 + jnp.exp(-jnp.abs(v)))
    return v * jnp.tanh(sp)


# -----------------------------------------------------------------------------
# Fused MelPreNet + masked_fill + positional-encoding kernel
# -----------------------------------------------------------------------------
def _mel_prenet_posenc_kernel(x_ref, m_ref, w1_ref, b1_ref, w2_ref, b2_ref,
                              pe_ref, o_ref):
    # x_ref: (1, TT, Dp)   m_ref: (1, TT, 1) f32 (1.0 = padded)
    # w1: (Dp, Hp)  b1: (1, Hp)  w2: (Hp, Dp)  b2: (1, Dp)  pe: (TT, Dp)
    x = x_ref[0]                                                     # (TT, Dp)
    h = jnp.dot(x, w1_ref[...], preferred_element_type=jnp.float32)  # MXU, f32 acc
    h = _mish(h + b1_ref[...].astype(jnp.float32))
    h = h.astype(w2_ref.dtype)                                       # keep matmul in input dtype
    y = jnp.dot(h, w2_ref[...], preferred_element_type=jnp.float32)
    y = _mish(y + b2_ref[...].astype(jnp.float32))
    keep = 1.0 - m_ref[0]                                            # (TT, 1)
    y = y * keep + pe_ref[...].astype(jnp.float32)                   # masked_fill then +pos_enc
    o_ref[0] = y.astype(o_ref.dtype)


def mel_decoder_forward(enc_seq, w, mask, params, max_seq_len, seq_tile=256):
    """Inference-mode MelDecoder.forward.

    enc_seq: (B, T, d_model) float; w: (B, d_w) style vector (unused, see TODO);
    mask: (B, T) bool, True = padded. Returns (dec_output (B, T, d_model), mask).
    In eval mode both branches of the PyTorch forward keep the full length T
    (max_seq_len only triggers truncation at training time), so L = T here.
    """
    del max_seq_len  # eval-mode: no truncation (see docstring)
    B, T, D = enc_seq.shape
    H = params["w1"].shape[1]
    L = T

    # Lane-dense padding (perf feedback): hidden dims -> multiples of 128.
    Dp = _round_up(D, 128)
    Hp = _round_up(H, 128)
    # Frame tiling: full block for short sequences, 256-frame tiles otherwise
    # (2*TT*Dp*4 + Hp/Dp weights stays far below the v7x 32 MiB scoped VMEM default).
    if L <= 512:
        TT, Lp = L, L
    else:
        TT = seq_tile
        Lp = _round_up(L, TT)

    xp = jnp.pad(enc_seq, ((0, 0), (0, Lp - L), (0, Dp - D)))
    mp = jnp.pad(mask.astype(jnp.float32), ((0, 0), (0, Lp - L)),
                 constant_values=1.0)[..., None]                      # (B, Lp, 1)
    w1 = jnp.pad(params["w1"], ((0, Dp - D), (0, Hp - H)))
    b1 = jnp.pad(params["b1"], ((0, Hp - H),)).reshape(1, Hp)
    w2 = jnp.pad(params["w2"], ((0, Hp - H), (0, Dp - D)))
    b2 = jnp.pad(params["b2"], ((0, Dp - D),)).reshape(1, Dp)
    pe = jnp.pad(jnp.asarray(_sinusoid_table(Lp, D)), ((0, 0), (0, Dp - D)))

    out = pl.pallas_call(
        _mel_prenet_posenc_kernel,
        out_shape=jax.ShapeDtypeStruct((B, Lp, Dp), enc_seq.dtype),
        grid_spec=pltpu.PrefetchScalarGridSpec(
            num_scalar_prefetch=0,
            grid=(B, Lp // TT),
            in_specs=[
                pl.BlockSpec((1, TT, Dp), lambda b, t: (b, t, 0)),   # x tile
                pl.BlockSpec((1, TT, 1), lambda b, t: (b, t, 0)),    # mask tile
                pl.BlockSpec((Dp, Hp), lambda b, t: (0, 0)),         # W1 (resident)
                pl.BlockSpec((1, Hp), lambda b, t: (0, 0)),          # b1
                pl.BlockSpec((Hp, Dp), lambda b, t: (0, 0)),         # W2 (resident)
                pl.BlockSpec((1, Dp), lambda b, t: (0, 0)),          # b2
                pl.BlockSpec((TT, Dp), lambda b, t: (t, 0)),         # pos enc tile
            ],
            out_specs=pl.BlockSpec((1, TT, Dp), lambda b, t: (b, t, 0)),
        ),
        compiler_params=pltpu.CompilerParams(
            dimension_semantics=("parallel", "parallel")),
        cost_estimate=pl.CostEstimate(
            flops=4 * B * Lp * Dp * Hp,
            transcendentals=3 * B * Lp * (Hp + Dp),
            bytes_accessed=4 * (2 * B * Lp * Dp + 2 * Dp * Hp + Lp * Dp + B * Lp)),
    )(xp, mp, w1, b1, w2, b2, pe)

    dec_output = out[:, :L, :D]
    # TODO(synk): SALNFFTBlock layer stack (multi-head self-attn + SALN + conv FFN)
    # is not defined in the provided spec; the layer loop is omitted and the style
    # vector `w` / slf_attn_mask are unused. Dropout is inference-mode identity.
    del w
    return dec_output, mask[:, :L]


# -----------------------------------------------------------------------------
# LengthRegulator kernel (previously reviewed) — feedback applied
# -----------------------------------------------------------------------------
def _length_regulator_kernel(tot_ref, cum_ref, x_ref, out_ref):
    # tot_ref: SMEM (B,) int32 (scalar prefetch) -- total expanded length per batch
    # cum_ref: (1, 2, S) int32 -- rows = [cum_excl, cum_incl]
    # x_ref:   (1, S, Dp)      out_ref: (1, TM, Dp)
    b = pl.program_id(0)
    t = pl.program_id(1)
    TM = out_ref.shape[1]
    S = x_ref.shape[1]
    t0 = t * TM

    @pl.when(t0 >= tot_ref[b])          # whole tile is padding -> skip mask build + MXU
    def _():
        out_ref[...] = jnp.zeros_like(out_ref)

    @pl.when(t0 < tot_ref[b])
    def _():
        cum_excl = cum_ref[0, 0:1, :]                                  # (1, S) int32
        cum_incl = cum_ref[0, 1:2, :]                                  # (1, S) int32
        rows = t0 + lax.broadcasted_iota(jnp.int32, (TM, S), 0)        # int32 frame indices
        # W[r, i] = 1 iff cum_excl[i] <= row < cum_incl[i]; built in x.dtype, f32 acc.
        W = ((rows >= cum_excl) & (rows < cum_incl)).astype(x_ref.dtype)
        out_ref[0] = jnp.dot(W, x_ref[0],
                             preferred_element_type=jnp.float32).astype(out_ref.dtype)


def length_regulator(x, duration, max_len, frame_tile=256):
    """x: (B,S,D), duration: (B,S) int. Returns (out (B,max_len,D), mel_len (B,))."""
    B, S, D = x.shape
    dur = jnp.maximum(duration.astype(jnp.int32), 0)           # clamp negatives
    cum_incl = jnp.cumsum(dur, axis=-1, dtype=jnp.int32)        # int32 cumsum in wrapper
    cum_excl = cum_incl - dur
    mel_len = cum_incl[:, -1]                                   # computed outside the kernel
    cum = jnp.stack([cum_excl, cum_incl], axis=1)               # (B, 2, S) int32

    Dp = _round_up(D, 128)                                      # lane-dense output columns
    if max_len <= 512:
        TM, Lp = max_len, max_len
    else:
        TM = frame_tile
        Lp = _round_up(max_len, TM)

    xp = jnp.pad(x, ((0, 0), (0, 0), (0, Dp - D)))

    out = pl.pallas_call(
        _length_regulator_kernel,
        out_shape=jax.ShapeDtypeStruct((B, Lp, Dp), x.dtype),
        grid_spec=pltpu.PrefetchScalarGridSpec(
            num_scalar_prefetch=1,                              # mel_len totals -> SMEM
            grid=(B, Lp // TM),
            in_specs=[
                pl.BlockSpec((1, 2, S), lambda b, t, tot: (b, 0, 0)),
                pl.BlockSpec((1, S, Dp), lambda b, t, tot: (b, 0, 0)),  # resident over t
            ],
            out_specs=pl.BlockSpec((1, TM, Dp), lambda b, t, tot: (b, t, 0)),
        ),
        compiler_params=pltpu.CompilerParams(
            dimension_semantics=("parallel", "parallel")),
        cost_estimate=pl.CostEstimate(
            flops=2 * B * Lp * S * Dp,
            transcendentals=0,
            bytes_accessed=4 * (B * S * Dp + B * Lp * Dp + 2 * B * S + B)),
    )(mel_len, cum, xp)

    return out[:, :max_len, :D], mel_len


# -----------------------------------------------------------------------------
# Pure numpy references
# -----------------------------------------------------------------------------
def _mel_decoder_reference(x, mask, params, max_seq_len):
    del max_seq_len
    x = np.asarray(x, np.float32)
    B, T, D = x.shape

    def mish(v):
        return v * np.tanh(np.maximum(v, 0.0) + np.log(1.0 + np.exp(-np.abs(v))))

    h = mish(x @ params["w1"] + params["b1"])
    y = mish(h @ params["w2"] + params["b2"])
    y = np.where(mask[..., None], 0.0, y)
    pe = _sinusoid_table(T, D)
    y = y + pe[None, :, :]
    return y.astype(np.float32), np.asarray(mask)


def _length_regulator_reference(x, duration, max_len):
    x = np.asarray(x)
    duration = np.asarray(duration)
    B, S, D = x.shape
    out = np.zeros((B, max_len, D), dtype=x.dtype)
    mel_len = np.zeros((B,), dtype=np.int32)
    for b in range(B):
        rows = []
        for i in range(S):
            n = max(int(duration[b, i]), 0)
            rows.append(np.repeat(x[b, i:i + 1], n, axis=0))
        expanded = np.concatenate(rows, axis=0) if rows else np.zeros((0, D), x.dtype)
        mel_len[b] = expanded.shape[0]
        Lc = min(expanded.shape[0], max_len)
        out[b, :Lc] = expanded[:Lc]
    return out, mel_len


if __name__ == "__main__":
    key = jax.random.PRNGKey(0)
    k = jax.random.split(key, 8)

    # ---- MelDecoder (prenet + positional encoding) -------------------------
    B, T, d_model, d_mel = 2, 16, 32, 64
    max_seq_len = 32
    enc_seq = jax.random.normal(k[0], (B, T, d_model), dtype=jnp.float32)
    w_style = jax.random.normal(k[1], (B, d_mel), dtype=jnp.float32)
    lengths = jnp.array([T, T - 5], dtype=jnp.int32)
    mask = jnp.arange(T)[None, :] >= lengths[:, None]            # (B, T) bool, True = pad
    params = dict(
        w1=0.1 * jax.random.normal(k[2], (d_model, d_mel), dtype=jnp.float32),
        b1=0.1 * jax.random.normal(k[3], (d_mel,), dtype=jnp.float32),
        w2=0.1 * jax.random.normal(k[4], (d_mel, d_model), dtype=jnp.float32),
        b2=0.1 * jax.random.normal(k[5], (d_model,), dtype=jnp.float32),
    )

    dec_out, out_mask = mel_decoder_forward(enc_seq, w_style, mask, params, max_seq_len)
    dec_out = jax.block_until_ready(dec_out)
    ref_out, ref_mask = _mel_decoder_reference(
        np.asarray(enc_seq), np.asarray(mask),
        {n: np.asarray(v) for n, v in params.items()}, max_seq_len)
    assert np.allclose(np.asarray(dec_out), ref_out, atol=2e-2, rtol=2e-2), \
        "mel_decoder output mismatch"
    assert np.array_equal(np.asarray(out_mask), ref_mask), "mask mismatch"

    # ---- LengthRegulator (previously reviewed kernel, feedback applied) ----
    S, D, max_len = 8, 32, 24
    x = jax.random.normal(k[6], (B, S, D), dtype=jnp.float32)
    duration = jax.random.randint(k[7], (B, S), minval=0, maxval=5, dtype=jnp.int32)
    lr_out, mel_len = length_regulator(x, duration, max_len)
    lr_out = jax.block_until_ready(lr_out)
    mel_len = jax.block_until_ready(mel_len)
    lr_ref, len_ref = _length_regulator_reference(np.asarray(x), np.asarray(duration), max_len)
    assert np.allclose(np.asarray(lr_out), lr_ref, atol=1e-5), "length_regulator mismatch"
    assert np.array_equal(np.asarray(mel_len), len_ref), "mel_len mismatch"

    print("KERNEL_OK")
</pallas_src>

<mosaic_0001>
module attributes {stable_mosaic.version = 11 : i64} {
  func.func @_mel_prenet_posenc_kernel(%arg0: i32, %arg1: i32, %arg2: memref<1x16x128xf32, #tpu.memory_space<vmem>>, %arg3: memref<1x16x1xf32, #tpu.memory_space<vmem>>, %arg4: memref<128x128xf32, #tpu.memory_space<vmem>>, %arg5: memref<1x128xf32, #tpu.memory_space<vmem>>, %arg6: memref<128x128xf32, #tpu.memory_space<vmem>>, %arg7: memref<1x128xf32, #tpu.memory_space<vmem>>, %arg8: memref<16x128xf32, #tpu.memory_space<vmem>>, %arg9: memref<1x16x128xf32, #tpu.memory_space<vmem>>) attributes {dimension_semantics = [#tpu.dimension_semantics<parallel>, #tpu.dimension_semantics<parallel>], iteration_bounds = array<i64: 2, 1>, scalar_prefetch = 0 : i64, scratch_operands = 0 : i64, tpu.core_type = #tpu.core_type<tc>, window_params = [{transform_indices = @transform_0, window_bounds = array<i64: 1, 16, 128>}, {transform_indices = @transform_1, window_bounds = array<i64: 1, 16, 1>}, {pipeline_mode = #tpu.pipeline_mode<synchronous>, transform_indices = @transform_2, window_bounds = array<i64: 128, 128>}, {pipeline_mode = #tpu.pipeline_mode<synchronous>, transform_indices = @transform_3, window_bounds = array<i64: 1, 128>}, {pipeline_mode = #tpu.pipeline_mode<synchronous>, transform_indices = @transform_4, window_bounds = array<i64: 128, 128>}, {pipeline_mode = #tpu.pipeline_mode<synchronous>, transform_indices = @transform_5, window_bounds = array<i64: 1, 128>}, {transform_indices = @transform_6, window_bounds = array<i64: 16, 128>}, {transform_indices = @transform_7, window_bounds = array<i64: 1, 16, 128>}]} {
    %c0 = arith.constant 0 : index
    %c0_0 = arith.constant 0 : index
    %c0_1 = arith.constant 0 : index
    %0 = vector.load %arg2[%c0, %c0_0, %c0_1] : memref<1x16x128xf32, #tpu.memory_space<vmem>>, vector<1x16x128xf32>
    %1 = vector.shape_cast %0 : vector<1x16x128xf32> to vector<16x128xf32>
    %c0_2 = arith.constant 0 : index
    %c0_3 = arith.constant 0 : index
    %2 = vector.load %arg4[%c0_2, %c0_3] : memref<128x128xf32, #tpu.memory_space<vmem>>, vector<128x128xf32>
    %cst = arith.constant dense<0.000000e+00> : vector<16x128xf32>
    %3 = tpu.matmul %1, %2, %cst {dimension_numbers = #tpu.dot_dimension_numbers<[1], [0], [0], [1], [0, 0, 1, 1], [], []>} : vector<16x128xf32>, vector<128x128xf32>, vector<16x128xf32> -> vector<16x128xf32>
    %c0_4 = arith.constant 0 : index
    %c0_5 = arith.constant 0 : index
    %4 = vector.load %arg5[%c0_4, %c0_5] : memref<1x128xf32, #tpu.memory_space<vmem>>, vector<1x128xf32>
    %5 = vector.broadcast %4 : vector<1x128xf32> to vector<16x128xf32>
    %6 = arith.addf %3, %5 : vector<16x128xf32>
    %cst_6 = arith.constant 0.000000e+00 : f32
    %7 = vector.broadcast %cst_6 : f32 to vector<16x128xf32>
    %8 = arith.maximumf %6, %7 : vector<16x128xf32>
    %9 = math.absf %6 : vector<16x128xf32>
    %cst_7 = arith.constant 0.000000e+00 : f32
    %10 = vector.broadcast %cst_7 : f32 to vector<16x128xf32>
    %11 = arith.subf %10, %9 : vector<16x128xf32>
    %12 = math.exp %11 : vector<16x128xf32>
    %cst_8 = arith.constant 1.000000e+00 : f32
    %13 = vector.broadcast %cst_8 : f32 to vector<16x128xf32>
    %14 = arith.addf %13, %12 : vector<16x128xf32>
    %15 = math.log %14 : vector<16x128xf32>
    %16 = arith.addf %8, %15 : vector<16x128xf32>
    %17 = math.tanh %16 : vector<16x128xf32>
    %18 = arith.mulf %6, %17 : vector<16x128xf32>
    %c0_9 = arith.constant 0 : index
    %c0_10 = arith.constant 0 : index
    %19 = vector.load %arg6[%c0_9, %c0_10] : memref<128x128xf32, #tpu.memory_space<vmem>>, vector<128x128xf32>
    %cst_11 = arith.constant dense<0.000000e+00> : vector<16x128xf32>
    %20 = tpu.matmul %18, %19, %cst_11 {dimension_numbers = #tpu.dot_dimension_numbers<[1], [0], [0], [1], [0, 0, 1, 1], [], []>} : vector<16x128xf32>, vector<128x128xf32>, vector<16x128xf32> -> vector<16x128xf32>
    %c0_12 = arith.constant 0 : index
    %c0_13 = arith.constant 0 : index
    %21 = vector.load %arg7[%c0_12, %c0_13] : memref<1x128xf32, #tpu.memory_space<vmem>>, vector<1x128xf32>
    %22 = vector.broadcast %21 : vector<1x128xf32> to vector<16x128xf32>
    %23 = arith.addf %20, %22 : vector<16x128xf32>
    %cst_14 = arith.constant 0.000000e+00 : f32
    %24 = vector.broadcast %cst_14 : f32 to vector<16x128xf32>
    %25 = arith.maximumf %23, %24 : vector<16x128xf32>
    %26 = math.absf %23 : vector<16x128xf32>
    %cst_15 = arith.constant 0.000000e+00 : f32
    %27 = vector.broadcast %cst_15 : f32 to vector<16x128xf32>
    %28 = arith.subf %27, %26 : vector<16x128xf32>
    %29 = math.exp %28 : vector<16x128xf32>
    %cst_16 = arith.constant 1.000000e+00 : f32
    %30 = vector.broadcast %cst_16 : f32 to vector<16x128xf32>
    %31 = arith.addf %30, %29 : vector<16x128xf32>
    %32 = math.log %31 : vector<16x128xf32>
    %33 = arith.addf %25, %32 : vector<16x128xf32>
    %34 = math.tanh %33 : vector<16x128xf32>
    %35 = arith.mulf %23, %34 : vector<16x128xf32>
    %c0_17 = arith.constant 0 : index
    %c0_18 = arith.constant 0 : index
    %c0_19 = arith.constant 0 : index
    %36 = vector.load %arg3[%c0_17, %c0_18, %c0_19] : memref<1x16x1xf32, #tpu.memory_space<vmem>>, vector<1x16x1xf32>
    %37 = vector.shape_cast %36 : vector<1x16x1xf32> to vector<16x1xf32>
    %cst_20 = arith.constant 1.000000e+00 : f32
    %38 = vector.broadcast %cst_20 : f32 to vector<16x1xf32>
    %39 = arith.subf %38, %37 : vector<16x1xf32>
    %40 = vector.broadcast %39 : vector<16x1xf32> to vector<16x128xf32>
    %41 = arith.mulf %35, %40 : vector<16x128xf32>
    %c0_21 = arith.constant 0 : index
    %c0_22 = arith.constant 0 : index
    %42 = vector.load %arg8[%c0_21, %c0_22] : memref<16x128xf32, #tpu.memory_space<vmem>>, vector<16x128xf32>
    %43 = arith.addf %41, %42 : vector<16x128xf32>
    %c0_23 = arith.constant 0 : index
    %c0_24 = arith.constant 0 : index
    %c0_25 = arith.constant 0 : index
    %44 = vector.load %arg9[%c0_23, %c0_24, %c0_25] : memref<1x16x128xf32, #tpu.memory_space<vmem>>, vector<1x16x128xf32>
    %45 = vector.shape_cast %44 : vector<1x16x128xf32> to vector<16x128xf32>
    %46 = vector.shape_cast %43 : vector<16x128xf32> to vector<1x16x128xf32>
    tpu.vector_store %arg9[%c0_23, %c0_24, %c0_25], %46 {strides = array<i32>} : memref<1x16x128xf32, #tpu.memory_space<vmem>>, vector<1x16x128xf32>,
    return
  }
  func.func @transform_0(%arg0: i32, %arg1: i32) -> (i32, i32, i32) {
    %c0_i32 = arith.constant 0 : i32
    %c0_i32_0 = arith.constant 0 : i32
    return %arg0, %arg1, %c0_i32 : i32, i32, i32
  }
  func.func @transform_1(%arg0: i32, %arg1: i32) -> (i32, i32, i32) {
    %c0_i32 = arith.constant 0 : i32
    %c0_i32_0 = arith.constant 0 : i32
    return %arg0, %arg1, %c0_i32 : i32, i32, i32
  }
  func.func @transform_2(%arg0: i32, %arg1: i32) -> (i32, i32) {
    %c0_i32 = arith.constant 0 : i32
    %c0_i32_0 = arith.constant 0 : i32
    %c0_i32_1 = arith.constant 0 : i32
    return %c0_i32, %c0_i32_0 : i32, i32
  }
  func.func @transform_3(%arg0: i32, %arg1: i32) -> (i32, i32) {
    %c0_i32 = arith.constant 0 : i32
    %c0_i32_0 = arith.constant 0 : i32
    %c0_i32_1 = arith.constant 0 : i32
    return %c0_i32, %c0_i32_0 : i32, i32
  }
  func.func @transform_4(%arg0: i32, %arg1: i32) -> (i32, i32) {
    %c0_i32 = arith.constant 0 : i32
    %c0_i32_0 = arith.constant 0 : i32
    %c0_i32_1 = arith.constant 0 : i32
    return %c0_i32, %c0_i32_0 : i32, i32
  }
  func.func @transform_5(%arg0: i32, %arg1: i32) -> (i32, i32) {
    %c0_i32 = arith.constant 0 : i32
    %c0_i32_0 = arith.constant 0 : i32
    %c0_i32_1 = arith.constant 0 : i32
    return %c0_i32, %c0_i32_0 : i32, i32
  }
  func.func @transform_6(%arg0: i32, %arg1: i32) -> (i32, i32) {
    %c0_i32 = arith.constant 0 : i32
    %c0_i32_0 = arith.constant 0 : i32
    return %arg1, %c0_i32 : i32, i32
  }
  func.func @transform_7(%arg0: i32, %arg1: i32) -> (i32, i32, i32) {
    %c0_i32 = arith.constant 0 : i32
    %c0_i32_0 = arith.constant 0 : i32
    return %arg0, %arg1, %c0_i32 : i32, i32, i32
  }
}

</mosaic_0001>

<bundles_post_ra>
// kernel: tpu_custom_call.1
= control target key start
LH: loop header
LB: loop body
LE: loop exit
PB: predicated region body
PF: predicated region fallthrough
CT: control target
= control target key end

     0   :  { %12 = vsyncpa [#allocation3], 0  ;;  %s1519_s0 = inlined_call_operand.vmem [shape: f32[2,16,128], index: 0, kind: input, shape index: {}]   ;;  %s1520_s1 = inlined_call_operand.vmem [shape: f32[2,16,1], index: 1, kind: input, shape index: {}]   ;;  %s1521_s2 = inlined_call_operand.hbm [shape: f32[128,128], index: 2, kind: input, shape index: {}]   ;;  %s1522_s3 = inlined_call_operand.vmem [shape: f32[1,128], index: 3, kind: input, shape index: {}]   ;;  %s1523_s4 = inlined_call_operand.hbm [shape: f32[128,128], index: 4, kind: input, shape index: {}]   ;;  %s1524_s5 = inlined_call_operand.vmem [shape: f32[1,128], index: 5, kind: input, shape index: {}]   ;;  %s1525_s6 = inlined_call_operand.vmem [shape: f32[16,128], index: 6, kind: input, shape index: {}]   ;;  %s1526_s7 = inlined_call_operand.hbm [shape: f32[2,16,128], index: 7, kind: output, shape index: {}]  }
   0x1   :  { %13 = vsyncpa [#allocation6], 0 }
   0x2   :  { %14 = vsyncpa [#allocation4], 0 }
   0x3   :  { %16 = vsyncpa [#allocation4 + $0x1], 0  ;;  %s1303_s24 = smov 0   ;;  %s1305_s25 = smov 0  }
   0x4   :  { %s1307_s26 = smov 0   ;;  %s1309_s27 = smov 0  }
   0x5   :  { %s1311_s28 = smov 0   ;;  %s1313_s29 = smov 0  }
   0x6 LB: > { %1533 = sst [smem:[#allocation11_spill]] %s1249_s28  ;;  %s810_s30 = sadd.s32 4294967295, %s1253_s29   ;;  %s1253_s29 = sphi %s1313_s29, %s22_s29   ;;  %s1249_s28 = sphi %s1311_s28, %s1547_s28   ;;  %s1245_s27 = sphi %s1309_s27, %s1546_s27   ;;  %s1241_s26 = sphi %s1307_s26, %s1550_s26   ;;  %s1237_s25 = sphi %s1305_s25, %s1549_s25   ;;  %s1233_s24 = sphi %s1303_s24, %s1548_s24  }
   0x7   : > { %s811_s8 = sadd.s32 4294967294, %s1253_s29   ;;  %s34_s9 = sadd.s32 1, %s1249_s28 }
   0x8   : > { %s209_s10 = sadd.s32 1, %s1241_s26  ;;  %p36_p0 = scmp.ge.s32.totalorder %s34_s9, 2 }
   0x9   : > { %p219_p1 = scmp.ne.s32.totalorder %s1241_s26, %s1237_s25  ;;  %p220_p2 = scmp.eq.s32.totalorder %s810_s30, 1 }
   0xa   : > { %p225_p3 = scmp.ne.s32.totalorder %s1237_s25, %s1233_s24  ;;  %s1552_s9 = smov (%p36_p0, %s34_s9), 0 }
   0xb   : > { %1534 = sst [smem:[#allocation12_spill]] %s1552_s9  ;;  %p1343_p4 = por %p220_p2, %p219_p1 }
   0xc   : > { %p226_p5 = scmp.eq.s32.totalorder %s811_s8, 1  ;;  %s204_s12 = ssub.s32 %s1249_s28, %s1552_s9 }
   0xd   : > { %s1535_s11 = scalar_select %p1343_p4, 1, 0 }
   0xe   : > { %p812_p6 = scmp.ge.s32.totalorder %s1253_s29, 1  ;;  %p207_p7 = scmp.eq.s32.totalorder %s204_s12, 0 }
   0xf   : > { %p1350_p8 = por %p226_p5, %p225_p3  ;;  %p233_p9 = scmp.lt.s32.totalorder %s1253_s29, 3 }
  0x10   : > { %s1356_s14 = scalar_select %p207_p7, %s1241_s26, %s209_s10  }
  0x11   : > { %s1536_s13 = scalar_select %p1350_p8, 1, 0 }
  0x12   : > { %1537 = sst [smem:[#allocation13_spill]] %s1356_s14  ;;  %p1358_p10 = pnand %p812_p6, %p233_p9 }
  0x13   : > { %p1362_p11 = scmp.eq.s32.totalorder %s810_s30, 0  ;;  %s1255_s17 = smov [#allocation2]  }
  0x14   : > { %s1538_s15 = scalar_select %p1358_p10, 1, 0 }
  0x15   : > { %s1539_s16 = scalar_select %p1362_p11, 1, 0 }
  0x16   : > { %p1015_p12 = pneg %p1358_p10  ;;  %s245_s18 = sshll.u32 %s1255_s17, 4  ;;  %s246_s18 = int_to_ptr.vmem [resolvable:$true] %s245_s18 }
  0x17   : > { %s1256_s20 = smov [#allocation5]   ;;  %s1111_s30 = scalar_lea.hbm %s1521_s2, 2048 }
  0x18   : > { %p1370_p13 = pnand %p1362_p11, %p1015_p12  ;;  %s261_s21 = sshll.u32 %s1256_s20, 4  ;;  %s1374_s21 = int_to_ptr.vmem [resolvable:$true] %s261_s21 }
  0x19   : > { %p1112_p0 = scmp.ne.s32.totalorder %s1521_s2, %s1111_s30  ;;  %p1118_p5 = scmp.lt.u32.totalorder %s1111_s30, %s1521_s2 }
  0x1a   : > { %p1113_p1 = pneg %p1370_p13 }
  0x1c   : > { %p1114_p2 = pnand %p1113_p1, %p1112_p0 }
  0x1e   : > { %p1115_p3 = pneg %p1114_p2 }
  0x20   : > { %p1120_p6 = pnand %p1118_p5, %p1115_p3 }
  0x22   : > { %1123 = shalt.err (!%p1120_p6)
}
  0x23   : > { %s1124_s20 = scalar_lea.vmem %s246_s18, 2048  ;;  %p1132_p8 = scmp.lt.s32.totalorder %s246_s18, %s246_s18 }
  0x24   : > { %p1125_p7 = scmp.ne.s32.totalorder %s246_s18, %s1124_s20  ;;  %p1133_p4 = scmp.lt.s32.totalorder %s1124_s20, %s1124_s20 }
  0x26   : > { %p1127_p9 = pnand %p1125_p7, %p1113_p1  ;;  %p1134_p11 = por %p1133_p4, %p1132_p8 }
  0x28   : > { %p1128_p12 = pneg %p1127_p9 }
  0x2a   : > { %p1135_p10 = pnand %p1134_p11, %p1128_p12 }
  0x2c   : > { %1138 = shalt.err (!%p1135_p10)
}
  0x2d   : > { %s1257_s22 = smov 128   ;;  %s1258_s23 = smov 8  }
  0x2e   : > { %1018 = dma.hbm_to_vmem [thread:$0]  (!%p1370_p13), %s1521_s2, 2048, %s246_s18, [#allocation3], %s1257_s22, %s1257_s22, %s1258_s23  }
  0x2f   : > { %s1139_s17 = scalar_lea.hbm %s1523_s4, 2048 }
  0x30   : > { %p1140_p0 = scmp.ne.s32.totalorder %s1523_s4, %s1139_s17  ;;  %p1146_p10 = scmp.lt.u32.totalorder %s1139_s17, %s1523_s4 }
  0x32   : > { %p1142_p4 = pnand %p1140_p0, %p1113_p1 }
  0x34   : > { %p1143_p8 = pneg %p1142_p4 }
  0x36   : > { %p1148_p11 = pnand %p1146_p10, %p1143_p8 }
  0x38   : > { %1151 = shalt.err (!%p1148_p11)
}
  0x39   : > { %s1152_s18 = scalar_lea.vmem %s1374_s21, 2048  ;;  %p1160_p6 = scmp.lt.s32.totalorder %s1374_s21, %s1374_s21 }
  0x3a   : > { %p1153_p2 = scmp.ne.s32.totalorder %s1374_s21, %s1152_s18  ;;  %p1161_p7 = scmp.lt.s32.totalorder %s1152_s18, %s1152_s18 }
  0x3c   : > { %p1155_p3 = pnand %p1153_p2, %p1113_p1  ;;  %p1162_p9 = por %p1161_p7, %p1160_p6 }
  0x3e   : > { %p1156_p5 = pneg %p1155_p3 }
  0x40   : > { %p1163_p12 = pnand %p1162_p9, %p1156_p5 }
  0x42   : > { %1166 = shalt.err (!%p1163_p12)
}
  0x43   : > { %1021 = dma.hbm_to_vmem [thread:$0]  (!%p1370_p13), %s1523_s4, 2048, %s1374_s21, [#allocation6], %s1257_s22, %s1257_s22, %s1258_s23  }
  0x44   : > { %p1541_p0 = scmp.ne.s32.totalorder %s1538_s15, 0 }
  0x45   : > { %p1542_p4 = scmp.ne.s32.totalorder (!%p1541_p0), %s1539_s16, 0 }
  0x46   : > { %315 = sbr.rel (%p1541_p0) target bundleno = 659 (0x293), region = 48 }
  0x4d   : > { %1220 = dma.done.wait (%p1542_p4), [#allocation3], 2048  }
  0x4e   : > { %1222 = vsyncadd (%p1542_p4), [#allocation3], 4294965248 }
  0x4f   : > { %1224 = dma.done.wait (%p1542_p4), [#allocation6], 2048  }
  0x50   : > { %1226 = vsyncadd (%p1542_p4), [#allocation6], 4294965248  ;;  %p370_p1 = scmp.lt.s32.totalorder %s1245_s27, 1  ;;  %v398_v0 = vld [vmem:[#allocation2] sm:$0xff]  ;;  %v399_v1 = vld [vmem:[#allocation2 + $0x8] sm:$0xff]  ;;  %v1259_v50 = vmov 0  }
  0x51   : > { %v400_v2 = vld [vmem:[#allocation2 + $0x10] sm:$0xff]  ;;  %v941_v3 = vpack.c.bf16 %v399_v1, %v398_v0  ;;  %v401_v4 = vld [vmem:[#allocation2 + $0x18] sm:$0xff]  ;;  %v402_v6 = vld [vmem:[#allocation2 + $0x20] sm:$0xff]  ;;  %1086 = vset.pattern.permute.xlu0 %v1259_v50  ;;  %s366_s20 = sand.u32 1, %s1237_s25   ;;  %s834_s19 = sshll.u32 %s1245_s27, 8 }
  0x52   : > { %s1435_s14 = scalar_select %p370_p1, %s1245_s27, 1  ;;  %v945_v5 = vpack.c.bf16 %v401_v4, %v400_v2  ;;  %v403_v7 = vld [vmem:[#allocation2 + $0x28] sm:$0xff]  ;;  %v404_v10 = vld [vmem:[#allocation2 + $0x30] sm:$0xff]  ;;  %v405_v11 = vld [vmem:[#allocation2 + $0x38] sm:$0xff] }
  0x53   : > { %942 = vmatprep.subr.bf16.mxu0 %v941_v3  ;;  %v949_v8 = vpack.c.bf16 %v403_v7, %v402_v6  ;;  %v953_v12 = vpack.c.bf16 %v405_v11, %v404_v10  ;;  %v406_v13 = vld [vmem:[#allocation2 + $0x40] sm:$0xff]  ;;  %v407_v14 = vld [vmem:[#allocation2 + $0x48] sm:$0xff]  ;;  %v408_v16 = vld [vmem:[#allocation2 + $0x50] sm:$0xff]  ;;  %s820_s18 = sshll.u32 %s366_s20, 4  ;;  %s1473_s27 = scalar_lea.sflag [#allocation4], %s366_s20 }
  0x54   : > { %s832_s15 = sshll.u32 %s1435_s14, 4  ;;  %944 = vmatpush3.bf16.msra.mxu0 %v941_v3  ;;  %v957_v15 = vpack.c.bf16 %v407_v14, %v406_v13  ;;  %v409_v17 = vld [vmem:[#allocation2 + $0x58] sm:$0xff]  ;;  %v410_v19 = vld [vmem:[#allocation2 + $0x60] sm:$0xff]  ;;  %v411_v20 = vld [vmem:[#allocation2 + $0x68] sm:$0xff]  ;;  %s368_s28 = scalar_lea.vmem [#allocation7], %s820_s18 }
  0x55   : > { %s1443_s21 = scalar_lea.vmem %s1519_s0, %s832_s15  ;;  %946 = vmatprep.subr.bf16.mxu0 %v945_v5  ;;  %v961_v18 = vpack.c.bf16 %v409_v17, %v408_v16  ;;  %v965_v21 = vpack.c.bf16 %v411_v20, %v410_v19  ;;  %v412_v22 = vld [vmem:[#allocation2 + $0x70] sm:$0xff]  ;;  %v413_v23 = vld [vmem:[#allocation2 + $0x78] sm:$0xff]  ;;  %v518_v26 = vld [vmem:[#allocation5] sm:$0xff]  ;;  %s387_s30 = scalar_lea.vmem %s1520_s1, %s832_s15 }
  0x56   : > { %v396_v9 = vld [vmem:[%s1443_s21] sm:$0xff]  ;;  %v969_v24 = vpack.c.bf16 %v413_v23, %v412_v22  ;;  %v397_v25 = vld [vmem:[%s1443_s21 + $0x8] sm:$0xff]  ;;  %v520_v29 = vld [vmem:[#allocation5 + $0x10] sm:$0xff]  ;;  %s676_s9 = sshll.u32 %s368_s28, 4  ;;  %p1543_p8 = scmp.ne.s32.totalorder %s1535_s11, 0  ;;  %s1466_s9 = int_to_ptr.vmem [resolvable:$true] %s676_s9 }
  0x57   : > { %903 = vmatprep.mubr.f32.mxu0 %v396_v9  ;;  %v519_v27 = vld [vmem:[#allocation5 + $0x8] sm:$0xff]  ;;  %v521_v30 = vld [vmem:[#allocation5 + $0x18] sm:$0xff]  ;;  %v522_v32 = vld [vmem:[#allocation5 + $0x20] sm:$0xff]  ;;  %s1167_s8 = scalar_lea.vmem %s1466_s9, 256  ;;  %s1260_s10 = smov [#allocation7]  }
  0x58   : > { %948 = vmatpush3.bf16.msra.mxu0 %v945_v5  ;;  %v973_v28 = vpack.c.bf16 %v519_v27, %v518_v26  ;;  %v977_v31 = vpack.c.bf16 %v521_v30, %v520_v29  ;;  %v523_v33 = vld [vmem:[#allocation5 + $0x28] sm:$0xff]  ;;  %v524_v35 = vld [vmem:[#allocation5 + $0x30] sm:$0xff]  ;;  %v525_v36 = vld [vmem:[#allocation5 + $0x38] sm:$0xff]  ;;  %p1168_p13 = scmp.ne.s32.totalorder %s1466_s9, %s1167_s8  ;;  %s1171_s12 = sshll.u32 %s1260_s10, 4  ;;  %s1172_s12 = int_to_ptr.vmem [resolvable:$false] %s1171_s12 }
  0x59   : > { %950 = vmatprep.subr.bf16.mxu0 %v949_v8  ;;  %v981_v34 = vpack.c.bf16 %v523_v33, %v522_v32  ;;  %v985_v37 = vpack.c.bf16 %v525_v36, %v524_v35  ;;  %v526_v38 = vld [vmem:[#allocation5 + $0x40] sm:$0xff]  ;;  %v527_v39 = vld [vmem:[#allocation5 + $0x48] sm:$0xff]  ;;  %v528_v41 = vld [vmem:[#allocation5 + $0x50] sm:$0xff]  ;;  %s1173_s17 = scalar_lea.vmem %s1172_s12, 512  ;;  %p1174_p2 = scmp.lt.s32.totalorder %s1466_s9, %s1172_s12 }
  0x5a   : > { %974 = vmatprep.subr.bf16.mxu1 %v973_v28  ;;  %v989_v40 = vpack.c.bf16 %v527_v39, %v526_v38  ;;  %v529_v42 = vld [vmem:[#allocation5 + $0x58] sm:$0xff]  ;;  %v530_v44 = vld [vmem:[#allocation5 + $0x60] sm:$0xff]  ;;  %v531_v45 = vld [vmem:[#allocation5 + $0x68] sm:$0xff]  ;;  %p1169_p10 = pnand %p1168_p13, %p1543_p8  ;;  %p1175_p3 = scmp.lt.s32.totalorder %s1173_s17, %s1167_s8 }
  0x5b   : > { %976 = vmatpush3.bf16.msra.mxu1 %v973_v28  ;;  %v993_v43 = vpack.c.bf16 %v529_v42, %v528_v41  ;;  %v997_v46 = vpack.c.bf16 %v531_v45, %v530_v44  ;;  %v532_v47 = vld [vmem:[#allocation5 + $0x70] sm:$0xff]  ;;  %v533_v48 = vld [vmem:[#allocation5 + $0x78] sm:$0xff]  ;;  %v638_v51 = vld [vmem:[%s387_s30] sm:$0xff] }
  0x5c   : > { %952 = vmatpush3.bf16.msra.mxu0 %v949_v8  ;;  %978 = vmatprep.subr.bf16.mxu1 %v977_v31  ;;  %v1001_v49 = vpack.c.bf16 %v533_v48, %v532_v47  ;;  %v639_v52 = vld [vmem:[%s387_s30 + $0x8] sm:$0xff]  ;;  %v640_v53 = vsub.f32 1.0, %v638_v51  ;;  %v825_v55 = vld [vmem:[%s1522_s3] ss:$0 sm:$0xff]  ;;  %s1471_s30 = scalar_lea.hbm %s1526_s7, %s834_s19  ;;  %p1170_p11 = pneg %p1169_p10 }
  0x5d   : > { %954 = vmatprep.subr.bf16.mxu0 %v953_v12  ;;  %v641_v54 = vsub.f32 1.0, %v639_v52  ;;  %v654_v48 = vld [vmem:[%s1525_s6] sm:$0xff]  ;;  %p1176_p5 = por %p1175_p3, %p1174_p2 }
  0x5e   : > { %644 = vperm.xlu0 %1086, %v640_v53  }
  0x5f   : > { %980 = vmatpush3.bf16.msra.mxu1 %v977_v31  ;;  %p1177_p6 = pnand %p1176_p5, %p1170_p11 }
  0x60   : > { %956 = vmatpush3.bf16.msra.mxu0 %v953_v12  ;;  %982 = vmatprep.subr.bf16.mxu1 %v981_v34 }
  0x61   : > { %958 = vmatprep.subr.bf16.mxu0 %v957_v15 }
  0x62   : > { %649 = vperm.xlu0 %1086, %v641_v54  }
  0x63   : > { %984 = vmatpush3.bf16.msra.mxu1 %v981_v34 }
  0x64   : > { %960 = vmatpush3.bf16.msra.mxu0 %v957_v15  ;;  %986 = vmatprep.subr.bf16.mxu1 %v985_v37 }
  0x65   : > { %962 = vmatprep.subr.bf16.mxu0 %v961_v18 }
  0x67   : > { %988 = vmatpush3.bf16.msra.mxu1 %v985_v37 }
  0x68   : > { %964 = vmatpush3.bf16.msra.mxu0 %v961_v18  ;;  %990 = vmatprep.subr.bf16.mxu1 %v989_v40  ;;  %v826_v18 = vld [vmem:[%s1524_s5] ss:$0 sm:$0xff] }
  0x69   : > { %966 = vmatprep.subr.bf16.mxu0 %v965_v21 }
  0x6b   : > { %992 = vmatpush3.bf16.msra.mxu1 %v989_v40 }
  0x6c   : > { %968 = vmatpush3.bf16.msra.mxu0 %v965_v21  ;;  %994 = vmatprep.subr.bf16.mxu1 %v993_v43 }
  0x6d   : > { %970 = vmatprep.subr.bf16.mxu0 %v969_v24 }
  0x6f   : > { %996 = vmatpush3.bf16.msra.mxu1 %v993_v43 }
  0x70   : > { %972 = vmatpush3.bf16.msra.mxu0 %v969_v24  ;;  %998 = vmatprep.subr.bf16.mxu1 %v997_v46 }
  0x73   : > { %904 = vmatmul.mubr.f32.vlgmr.msra.gmra.mrb[0].mxu0 %v397_v25  ;;  %1000 = vmatpush3.bf16.msra.mxu1 %v997_v46  ;;  %v655_v46 = vld [vmem:[%s1525_s6 + $0x8] sm:$0xff] }
  0x74   : > { %1002 = vmatprep.subr.bf16.mxu1 %v1001_v49 }
  0x77   : > { %1004 = vmatpush3.bf16.msra.mxu1 %v1001_v49 }
  0xdd   : > { %v645_v41 = vpop.permute.xlu0 %644 }
  0xe1   : > { %v650_v47 = vpop.permute.xlu0 %649 }
 0x146   : > { %v905_v56 = vpop.f32.mrb[0].mxu0 }
 0x147   : > { %v493_v57 = vadd.f32 %v905_v56, %v825_v55  ;;  %v487_v58 = vpop.f32.mrb[1].mxu0 }
 0x148   : > { %v488_v59 = vadd.f32 %v825_v55, %v487_v58 }
 0x149   : > { %v499_v60 = vand.u32 2147483647, %v493_v57  ;;  %v497_v8 = vmax.f32 %v493_v57, 0.0 }
 0x14a   : > { %v498_v61 = vand.u32 2147483647, %v488_v59  ;;  %v496_v10 = vmax.f32 %v488_v59, 0.0 }
 0x14b   : > { %v501_v62 = vsub.f32 0.0, %v499_v60 }
 0x14c   : > { %v500_v63 = vsub.f32 0.0, %v498_v61 }
 0x14d   : > { %v504_v0 = vmul.f32 1.442695, %v501_v62 }
 0x14e   : > { %v502_v1 = vmul.f32 1.442695, %v500_v63 }
 0x14f   : > { %1087 = vpow2.f32 %v504_v0 }
 0x150   : > { %1089 = vpow2.f32 %v502_v1 }
 0x159   : > { %v1088_v2 = vpop.eup %1087 }
 0x15a   : > { %v1090_v3 = vpop.eup %1089  ;;  %v507_v4 = vadd.f32 1.0, %v1088_v2 }
 0x15b   : > { %v506_v5 = vadd.f32 1.0, %v1090_v3 }
 0x15c   : > { %1091 = vlog2.f32 %v507_v4 }
 0x15d   : > { %1093 = vlog2.f32 %v506_v5 }
 0x166   : > { %v1092_v6 = vpop.eup %1091 }
 0x167   : > { %v1094_v7 = vpop.eup %1093  ;;  %v511_v9 = vmul.f32 0.6931472, %v1092_v6 }
 0x168   : > { %v509_v11 = vmul.f32 0.6931472, %v1094_v7 }
 0x169   : > { %v513_v12 = vadd.f32 %v511_v9, %v497_v8 }
 0x16a   : > { %v512_v13 = vadd.f32 %v509_v11, %v496_v10 }
 0x16b   : > { %1095 = vtanh.f32 %v513_v12 }
 0x16c   : > { %1097 = vtanh.f32 %v512_v13 }
 0x175   : > { %v1096_v14 = vpop.eup %1095 }
 0x176   : > { %v1098_v15 = vpop.eup %1097  ;;  %v517_v17 = vmul.f32 %v1096_v14, %v493_v57 }
 0x177   : > { %v516_v16 = vmul.f32 %v1098_v15, %v488_v59 }
 0x179   : > { %938 = vmatprep.mubr.f32.mxu1 %v516_v16 }
 0x17a   : > { %939 = vmatmul.mubr.f32.vlgmr.msra.gmra.mrb[0].mxu1 %v517_v17 }
 0x24d   : > { %v940_v19 = vpop.f32.mrb[0].mxu1 }
 0x24e   : > { %v613_v20 = vadd.f32 %v940_v19, %v826_v18  ;;  %v607_v21 = vpop.f32.mrb[1].mxu1 }
 0x24f   : > { %v608_v22 = vadd.f32 %v826_v18, %v607_v21 }
 0x250   : > { %v619_v23 = vand.u32 2147483647, %v613_v20  ;;  %v617_v35 = vmax.f32 %v613_v20, 0.0 }
 0x251   : > { %v618_v24 = vand.u32 2147483647, %v608_v22  ;;  %v616_v37 = vmax.f32 %v608_v22, 0.0 }
 0x252   : > { %v621_v25 = vsub.f32 0.0, %v619_v23 }
 0x253   : > { %v620_v26 = vsub.f32 0.0, %v618_v24 }
 0x254   : > { %v624_v27 = vmul.f32 1.442695, %v621_v25 }
 0x255   : > { %v622_v28 = vmul.f32 1.442695, %v620_v26 }
 0x256   : > { %1099 = vpow2.f32 %v624_v27 }
 0x257   : > { %1101 = vpow2.f32 %v622_v28 }
 0x260   : > { %v1100_v29 = vpop.eup %1099 }
 0x261   : > { %v1102_v30 = vpop.eup %1101  ;;  %v627_v31 = vadd.f32 1.0, %v1100_v29 }
 0x262   : > { %v626_v32 = vadd.f32 1.0, %v1102_v30 }
 0x263   : > { %1103 = vlog2.f32 %v627_v31 }
 0x264   : > { %1105 = vlog2.f32 %v626_v32 }
 0x26d   : > { %v1104_v33 = vpop.eup %1103 }
 0x26e   : > { %v1106_v34 = vpop.eup %1105  ;;  %v631_v36 = vmul.f32 0.6931472, %v1104_v33 }
 0x26f   : > { %v629_v38 = vmul.f32 0.6931472, %v1106_v34 }
 0x270   : > { %v633_v39 = vadd.f32 %v631_v36, %v617_v35 }
 0x271   : > { %v632_v40 = vadd.f32 %v629_v38, %v616_v37 }
 0x272   : > { %1107 = vtanh.f32 %v633_v39 }
 0x273   : > { %1109 = vtanh.f32 %v632_v40 }
 0x27c   : > { %v1108_v42 = vpop.eup %1107 }
 0x27d   : > { %v1110_v43 = vpop.eup %1109  ;;  %v637_v44 = vmul.f32 %v1108_v42, %v613_v20 }
 0x27e   : > { %v636_v45 = vmul.f32 %v1110_v43, %v608_v22 }
 0x27f   : > { %v653_v49 = vmul.f32 %v650_v47, %v637_v44 }
 0x280   : > { %v652_v50 = vmul.f32 %v645_v41, %v636_v45 }
 0x281   : > { %v657_v51 = vadd.f32 %v655_v46, %v653_v49 }
 0x282   : > { %v656_v52 = vadd.f32 %v654_v48, %v652_v50 }
 0x283   : > { %659 = vst [vmem:[%s368_s28 + $0x8] sm:$0xff] %v657_v51 }
 0x284   : > { %658 = vst [vmem:[%s368_s28] sm:$0xff] %v656_v52 }
 0x285   : > { %1180 = shalt.err (!%p1177_p6)
}
 0x286   : > { %s1181_s20 = scalar_lea.hbm %s1471_s30, 256  ;;  %s1185_s14 = scalar_lea.hbm %s1526_s7, 512 }
 0x287   : > { %p1182_p7 = scmp.ne.s32.totalorder %s1471_s30, %s1181_s20  ;;  %p1186_p0 = scmp.lt.u32.totalorder %s1471_s30, %s1526_s7 }
 0x288   : > { %p1187_p4 = scmp.lt.u32.totalorder %s1185_s14, %s1181_s20  ;;  %p1189_p13 = scmp.lt.u32.totalorder %s1181_s20, %s1471_s30 }
 0x289   : > { %p1183_p9 = pnand %p1182_p7, %p1543_p8 }
 0x28a   : > { %p1188_p1 = por %p1187_p4, %p1186_p0 }
 0x28b   : > { %p1184_p12 = pneg %p1183_p9 }
 0x28c   : > { %p1190_p10 = por %p1189_p13, %p1188_p1 }
 0x28e   : > { %p1191_p11 = pnand %p1190_p10, %p1184_p12 }
 0x290   : > { %1194 = shalt.err (!%p1191_p11)
}
 0x291   : > { %s1261_s16 = smov 128   ;;  %s1262_s21 = smov 8  }
 0x292   : > { %1013 = dma.vmem_to_hbm [thread:$0]  (%p1543_p8), %s1466_s9, 256, %s1471_s30, %s1473_s27, %s1261_s16, %s1261_s16, %s1262_s21  }
 0x293 PF: > { %p1030_p2 = scmp.ge.s32.totalorder %s1253_s29, 2  ;;  %s691_s22 = sand.u32 1, %s1233_s24  }
 0x294   : > { %p1544_p3 = scmp.ne.s32.totalorder %s1536_s13, 0  ;;  %s692_s23 = scalar_lea.sflag [#allocation4], %s691_s22 }
 0x296   : > { %p1023_p5 = pnand %p1030_p2, %p1544_p3 }
 0x298   : > { %1228 = dma.done.wait (!%p1023_p5), %s692_s23, 256  }
 0x299   : > { %1230 = vsyncadd (!%p1023_p5), %s692_s23, 4294967040  ;;  %s22_s29 = sadd.s32 1, %s1253_s29   ;;  %s1545_s8 = sld [smem:[#allocation13_spill]] }
 0x29a   : > { %p19_p6 = scmp.ge.s32.totalorder %s22_s29, 4   ;;  %s1546_s27 = sld [smem:[#allocation11_spill]] }
 0x29b   : > { %s1547_s28 = sld [smem:[#allocation12_spill]]  ;;  %s1548_s24 = smov %s1237_s25 }
 0x29c   : > { %s1549_s25 = smov %s1241_s26  ;;  %21 = sbr.rel (!%p19_p6) target bundleno = 6 (0x6), region = 98 }
 0x29f   : > { %s1550_s26 = smov %s1545_s8 }
 0x2a3   :  { %697 = vsyncpa [#allocation3], 1 }
 0x2a4   :  { %699 = vsyncpa [#allocation3 + $0x1], 1 }
 0x2a5   :  { %700 = vsyncpa [#allocation6], 1 }
 0x2a6   :  { %701 = vsyncpa [#allocation4], 1 }
 0x2a7   :  { %703 = vsyncpa [#allocation4 + $0x1], 1 }

</bundles_post_ra>
